<compile_context>
chip_gen: v6e
topology: v6e:2x2x1
jax: 0.10.0
libtpu: 0.0.40
codegen_flags: <defaults>
</compile_context>

<pallas_src>
import functools
import math

import jax
import jax.numpy as jnp
from jax.experimental import pallas as pl
from jax.experimental.pallas import tpu as pltpu

LANES = 128


@functools.lru_cache(maxsize=1)
def _chip_kind():
    try:
        return jax.devices()[0].device_kind.lower()
    except Exception:  # pragma: no cover - defensive only
        return ""


def _sdr_kernel(est_ref, orig_ref, sum_out_ref, neq_out_ref, sum_acc, neq_acc,
                *, inner_steps, last_block, rows_in_last, block_rows,
                acc_rows, one_log, guard_overrun):
    c = pl.program_id(0)   # core-split axis ("parallel"; size 1 off-v7x)
    j = pl.program_id(1)   # reduction axis ("arbitrary")

    @pl.when(j == 0)
    def _init():
        sum_acc[...] = jnp.zeros_like(sum_acc)
        neq_acc[...] = jnp.zeros_like(neq_acc)

    blk = c * inner_steps + j   # logical block id (may exceed last_block on
                                # the 2-core split with an odd block count)
    eps = jnp.float32(1e-8)

    def accumulate(e, o):
        # Regroup to (groups, acc_rows, 128): whole (8,128) tiles, free view.
        # Reductions over axis 0 are pure VALU adds / mask ORs into one vreg.
        e3 = e.reshape(-1, acc_rows, LANES)
        o3 = o.reshape(-1, acc_rows, LANES)
        d3 = o3 - e3
        num = o3 * o3 + eps
        den = d3 * d3 + eps
        if one_log:
            # v7x: one EUP log + exact divide instead of two logs (EUP slot is
            # the scarce one at 3.2 TB/s HBM).  Exact divide keeps accuracy.
            sdr_raw = jnp.log(num / den)
        else:
            # v5e/v6e: two logs are fully hidden under HBM time.
            sdr_raw = jnp.log(num) - jnp.log(den)
        sum_acc[...] += jnp.sum(sdr_raw, axis=0)
        neq = jnp.any(o3 != e3, axis=0)            # torch.equal semantics
        neq_acc[...] = jnp.maximum(neq_acc[...], neq.astype(jnp.float32))

    needs_mask = rows_in_last != block_rows        # static (Python bool)

    if needs_mask:
        @pl.when(blk < last_block)                 # fast path: no mask at all
        def _full():
            accumulate(est_ref[...].astype(jnp.float32),
                       orig_ref[...].astype(jnp.float32))

        @pl.when(blk == last_block)                # cold path: ragged rows
        def _tail():
            row = jax.lax.broadcasted_iota(jnp.int32, (block_rows, LANES), 0)
            valid = row < rows_in_last
            e = jnp.where(valid, est_ref[...].astype(jnp.float32), 0.0)
            o = jnp.where(valid, orig_ref[...].astype(jnp.float32), 0.0)
            accumulate(e, o)   # masked zeros contribute exactly 0 to both accs
        # blk > last_block (clamped duplicate block): skipped entirely.
    else:
        if guard_overrun:
            @pl.when(blk <= last_block)            # skip clamped duplicate blk
            def _full():
                accumulate(est_ref[...].astype(jnp.float32),
                           orig_ref[...].astype(jnp.float32))
        else:
            accumulate(est_ref[...].astype(jnp.float32),
                       orig_ref[...].astype(jnp.float32))

    @pl.when(j == inner_steps - 1)
    def _finalize():
        # Single tiny cross-lane/sublane reduce per core, once per kernel call.
        sum_out_ref[0, 0] = jnp.sum(sum_acc[...])
        neq_out_ref[0, 0] = jnp.max(neq_acc[...])


def _sdr_partial_pallas(est2, orig2, block_rows, ncores, one_log):
    """Returns (sum of ln(num)-ln(den), any(orig != est)) over a (rows,128) slab."""
    rows = est2.shape[0]
    min_item = min(est2.dtype.itemsize, orig2.dtype.itemsize)
    sub = max(8, 32 // min_item)          # f32 -> 8, bf16 -> 16, int8/fp8 -> 32

    if block_rows >= rows:
        block_rows = rows                 # single full-extent block (always legal)
    else:
        block_rows = max(sub, (block_rows // sub) * sub)

    total_blocks = pl.cdiv(rows, block_rows)
    if total_blocks == 1:
        ncores = 1
    inner_steps = pl.cdiv(total_blocks, ncores)
    last_block = total_blocks - 1
    rows_in_last = rows - last_block * block_rows
    acc_rows = 8 if block_rows % 8 == 0 else block_rows
    guard_overrun = (ncores * inner_steps) > total_blocks

    def in_index(c, j):
        # Clamp so an out-of-range logical block (odd block count on the 2-core
        # split) re-reads the last block; the kernel skips accumulating it.
        return (jnp.minimum(c * inner_steps + j, last_block), 0)

    in_spec = pl.BlockSpec((block_rows, LANES), in_index)
    out_spec = pl.BlockSpec((1, 1), lambda c, j: (c, 0),
                            memory_space=pltpu.SMEM)

    kernel = functools.partial(
        _sdr_kernel, inner_steps=inner_steps, last_block=last_block,
        rows_in_last=rows_in_last, block_rows=block_rows, acc_rows=acc_rows,
        one_log=one_log, guard_overrun=guard_overrun)

    # Double-buffered input footprint; raise the scoped-VMEM limit only when
    # blocks are big enough (v7x-sized tiles) to need it, with headroom and a
    # cap well under every chip's physical VMEM.
    in_bytes = 2 * block_rows * LANES * (est2.dtype.itemsize
                                         + orig2.dtype.itemsize)
    cp_kwargs = dict(dimension_semantics=("parallel", "arbitrary"))
    if in_bytes > (12 << 20):
        cp_kwargs["vmem_limit_bytes"] = int(min(in_bytes + (4 << 20), 48 << 20))

    sums, neqs = pl.pallas_call(
        kernel,
        out_shape=(jax.ShapeDtypeStruct((ncores, 1), jnp.float32),
                   jax.ShapeDtypeStruct((ncores, 1), jnp.float32)),
        grid_spec=pltpu.PrefetchScalarGridSpec(
            num_scalar_prefetch=0,
            grid=(ncores, inner_steps),
            in_specs=[in_spec, in_spec],
            out_specs=(out_spec, out_spec),
            scratch_shapes=[
                pltpu.VMEM((acc_rows, LANES), jnp.float32),   # SDR ln-sum acc
                pltpu.VMEM((acc_rows, LANES), jnp.float32),   # "not equal" acc
            ],
        ),
        compiler_params=pltpu.CompilerParams(**cp_kwargs),
    )(est2, orig2)

    return jnp.sum(sums), jnp.max(neqs)


@functools.partial(jax.jit, static_argnames=("block_rows",))
def sdr_loss(estimated_signal, original_signal, block_rows=None):
    """Pallas implementation of SDRLoss.forward."""
    kind = _chip_kind()
    is_v7 = "v7" in kind
    ncores = 2 if is_v7 else 1            # megacore split only where it exists
    one_log = is_v7                       # single-log SDR form only on v7x
    if block_rows is None:
        block_rows = 8192 if is_v7 else 2048

    est = estimated_signal.reshape(-1)    # free reshape, native dtype kept
    orig = original_signal.reshape(-1)
    n = est.shape[0]
    rem = n % LANES
    n_main = n - rem

    f32 = jnp.float32
    eps = f32(1e-8)

    # <=127-element ragged tail handled in plain JAX (no full-array pad copy).
    tail_sum = f32(0.0)
    tail_neq = f32(0.0)
    if rem:
        te = est[n_main:].astype(f32)
        to = orig[n_main:].astype(f32)
        td = to - te
        tail_sum = jnp.sum(jnp.log(to * to + eps) - jnp.log(td * td + eps))
        tail_neq = jnp.any(to != te).astype(f32)

    if n_main == 0:
        total, any_neq = tail_sum, tail_neq
    else:
        if rem:
            # Only taken for ragged numel.  XLA may materialize this
            # 128-aligned prefix slice; it is at most the traffic of the old
            # jnp.pad and is skipped entirely (pure free reshape) whenever
            # numel % 128 == 0.
            est_m, orig_m = est[:n_main], orig[:n_main]
        else:
            est_m, orig_m = est, orig
        rows = n_main // LANES
        est2 = est_m.reshape(rows, LANES)       # free reshape of contiguous data
        orig2 = orig_m.reshape(rows, LANES)
        ksum, kneq = _sdr_partial_pallas(est2, orig2, block_rows, ncores,
                                         one_log)
        total = ksum + tail_sum
        any_neq = jnp.maximum(kneq, tail_neq)

    # 10*log10(.) factor and 1/n hoisted out of the kernel, applied once.
    scale = f32(10.0 / (math.log(10.0) * n))
    loss = jnp.exp(-total * scale)
    # torch.equal(est, orig) special case: compute_sdr -> -inf  =>  loss = +inf
    return jnp.where(any_neq > 0, loss, f32(jnp.inf))


if __name__ == "__main__":
    key = jax.random.PRNGKey(0)
    k1, k2, k3, k4 = jax.random.split(key, 4)
    eps = 1e-8

    # 1) Aligned numel (2*4*16*16 = 2048 = 16*128): zero-copy free-reshape path.
    estimated = jax.random.normal(k1, (2, 4, 16, 16), dtype=jnp.float32)
    original = estimated + jax.random.normal(k2, (2, 4, 16, 16),
                                             dtype=jnp.float32)
    out = sdr_loss(estimated, original)
    jax.block_until_ready(out)
    sdr_ref = 10.0 * (jnp.log10(original ** 2 + eps)
                      - jnp.log10((original - estimated) ** 2 + eps))
    ref = jnp.exp(-jnp.mean(sdr_ref))
    assert jnp.allclose(out, ref, rtol=1e-4, atol=1e-6), (out, ref)

    # 2) torch.equal special case -> +inf.
    out_eq = sdr_loss(estimated, estimated)
    jax.block_until_ready(out_eq)
    assert jnp.isinf(out_eq) and out_eq > 0, out_eq

    # 3) Ragged numel (3*5*1000 = 15000 = 117*128 + 24) with a small block size:
    #    exercises the plain-JAX tail, the masked ragged last block (pl.when
    #    cold path), and a multi-block reduction grid.
    a = jax.random.normal(k3, (3, 5, 1000), dtype=jnp.float32)
    b = a + jax.random.normal(k4, (3, 5, 1000), dtype=jnp.float32)
    out2 = sdr_loss(a, b, block_rows=8)
    jax.block_until_ready(out2)
    sdr_ref2 = 10.0 * (jnp.log10(b ** 2 + eps)
                       - jnp.log10((b - a) ** 2 + eps))
    ref2 = jnp.exp(-jnp.mean(sdr_ref2))
    assert jnp.allclose(out2, ref2, rtol=1e-4, atol=1e-6), (out2, ref2)

    print("KERNEL_OK")
</pallas_src>

<mosaic_0001>
module attributes {stable_mosaic.version = 11 : i64} {
  func.func @_sdr_kernel(%arg0: i32, %arg1: i32, %arg2: memref<16x128xf32, #tpu.memory_space<vmem>>, %arg3: memref<16x128xf32, #tpu.memory_space<vmem>>, %arg4: memref<1x1xf32, #tpu.memory_space<smem>>, %arg5: memref<1x1xf32, #tpu.memory_space<smem>>, %arg6: memref<8x128xf32, #tpu.memory_space<vmem>>, %arg7: memref<8x128xf32, #tpu.memory_space<vmem>>) attributes {dimension_semantics = [#tpu.dimension_semantics<parallel>, #tpu.dimension_semantics<arbitrary>], iteration_bounds = array<i64: 1, 1>, scalar_prefetch = 0 : i64, scratch_operands = 2 : i64, tpu.core_type = #tpu.core_type<tc>, window_params = [{transform_indices = @transform_0, window_bounds = array<i64: 16, 128>}, {transform_indices = @transform_1, window_bounds = array<i64: 16, 128>}, {transform_indices = @transform_2, window_bounds = array<i64: 1, 1>}, {transform_indices = @transform_3, window_bounds = array<i64: 1, 1>}]} {
    %c0_i32 = arith.constant 0 : i32
    %0 = arith.cmpi eq, %arg1, %c0_i32 : i32
    %1 = arith.extui %0 : i1 to i32
    %c0_i32_0 = arith.constant 0 : i32
    %2 = arith.cmpi ne, %1, %c0_i32_0 : i32
    scf.if %2 {
      %cst_20 = arith.constant 0.000000e+00 : f32
      %36 = vector.broadcast %cst_20 : f32 to vector<8x128xf32>
      %c0_21 = arith.constant 0 : index
      %c0_22 = arith.constant 0 : index
      %37 = vector.load %arg6[%c0_21, %c0_22] : memref<8x128xf32, #tpu.memory_space<vmem>>, vector<8x128xf32>
      tpu.vector_store %arg6[%c0_21, %c0_22], %36 {strides = array<i32>} : memref<8x128xf32, #tpu.memory_space<vmem>>, vector<8x128xf32>,
      %cst_23 = arith.constant 0.000000e+00 : f32
      %38 = vector.broadcast %cst_23 : f32 to vector<8x128xf32>
      %c0_24 = arith.constant 0 : index
      %c0_25 = arith.constant 0 : index
      %39 = vector.load %arg7[%c0_24, %c0_25] : memref<8x128xf32, #tpu.memory_space<vmem>>, vector<8x128xf32>
      tpu.vector_store %arg7[%c0_24, %c0_25], %38 {strides = array<i32>} : memref<8x128xf32, #tpu.memory_space<vmem>>, vector<8x128xf32>,
    } else {
    }
    %c0 = arith.constant 0 : index
    %c0_1 = arith.constant 0 : index
    %3 = vector.load %arg2[%c0, %c0_1] : memref<16x128xf32, #tpu.memory_space<vmem>>, vector<16x128xf32>
    %c0_2 = arith.constant 0 : index
    %c0_3 = arith.constant 0 : index
    %4 = vector.load %arg3[%c0_2, %c0_3] : memref<16x128xf32, #tpu.memory_space<vmem>>, vector<16x128xf32>
    %5 = vector.shape_cast %3 : vector<16x128xf32> to vector<2x8x128xf32>
    %6 = vector.shape_cast %4 : vector<16x128xf32> to vector<2x8x128xf32>
    %7 = arith.subf %6, %5 : vector<2x8x128xf32>
    %8 = arith.mulf %6, %6 : vector<2x8x128xf32>
    %cst = arith.constant 9.99999993E-9 : f32
    %9 = vector.broadcast %cst : f32 to vector<2x8x128xf32>
    %10 = arith.addf %8, %9 : vector<2x8x128xf32>
    %11 = arith.mulf %7, %7 : vector<2x8x128xf32>
    %cst_4 = arith.constant 9.99999993E-9 : f32
    %12 = vector.broadcast %cst_4 : f32 to vector<2x8x128xf32>
    %13 = arith.addf %11, %12 : vector<2x8x128xf32>
    %14 = math.log %10 : vector<2x8x128xf32>
    %15 = math.log %13 : vector<2x8x128xf32>
    %16 = arith.subf %14, %15 : vector<2x8x128xf32>
    %c0_5 = arith.constant 0 : index
    %c0_6 = arith.constant 0 : index
    %17 = vector.load %arg6[%c0_5, %c0_6] : memref<8x128xf32, #tpu.memory_space<vmem>>, vector<8x128xf32>
    %cst_7 = arith.constant dense<0.000000e+00> : vector<8x128xf32>
    %18 = vector.multi_reduction <add>, %16, %cst_7 [0] : vector<2x8x128xf32> to vector<8x128xf32>
    %19 = arith.addf %17, %18 : vector<8x128xf32>
    %c0_8 = arith.constant 0 : index
    %c0_9 = arith.constant 0 : index
    %20 = vector.load %arg6[%c0_8, %c0_9] : memref<8x128xf32, #tpu.memory_space<vmem>>, vector<8x128xf32>
    tpu.vector_store %arg6[%c0_8, %c0_9], %19 {strides = array<i32>} : memref<8x128xf32, #tpu.memory_space<vmem>>, vector<8x128xf32>,
    %21 = arith.cmpf one, %6, %5 : vector<2x8x128xf32>
    %cst_10 = arith.constant 1.000000e+00 : f32
    %cst_11 = arith.constant 0.000000e+00 : f32
    %22 = vector.broadcast %cst_10 : f32 to vector<2x8x128xf32>
    %23 = vector.broadcast %cst_11 : f32 to vector<2x8x128xf32>
    %24 = arith.select %21, %22, %23 : vector<2x8x128xi1>, vector<2x8x128xf32>
    %cst_12 = arith.constant dense<0xFF800000> : vector<8x128xf32>
    %25 = vector.multi_reduction <maximumf>, %24, %cst_12 [0] : vector<2x8x128xf32> to vector<8x128xf32>
    %cst_13 = arith.constant 0.000000e+00 : f32
    %26 = vector.broadcast %cst_13 : f32 to vector<8x128xf32>
    %27 = arith.cmpf ogt, %25, %26 : vector<8x128xf32>
    %c0_14 = arith.constant 0 : index
    %c0_15 = arith.constant 0 : index
    %28 = vector.load %arg7[%c0_14, %c0_15] : memref<8x128xf32, #tpu.memory_space<vmem>>, vector<8x128xf32>
    %29 = arith.extui %27 : vector<8x128xi1> to vector<8x128xi32>
    %30 = arith.sitofp %29 : vector<8x128xi32> to vector<8x128xf32>
    %31 = arith.maximumf %28, %30 : vector<8x128xf32>
    %c0_16 = arith.constant 0 : index
    %c0_17 = arith.constant 0 : index
    %32 = vector.load %arg7[%c0_16, %c0_17] : memref<8x128xf32, #tpu.memory_space<vmem>>, vector<8x128xf32>
    tpu.vector_store %arg7[%c0_16, %c0_17], %31 {strides = array<i32>} : memref<8x128xf32, #tpu.memory_space<vmem>>, vector<8x128xf32>,
    %c0_i32_18 = arith.constant 0 : i32
    %33 = arith.cmpi eq, %arg1, %c0_i32_18 : i32
    %34 = arith.extui %33 : i1 to i32
    %c0_i32_19 = arith.constant 0 : i32
    %35 = arith.cmpi ne, %34, %c0_i32_19 : i32
    scf.if %35 {
      %c0_20 = arith.constant 0 : index
      %c0_21 = arith.constant 0 : index
      %36 = vector.load %arg6[%c0_20, %c0_21] : memref<8x128xf32, #tpu.memory_space<vmem>>, vector<8x128xf32>
      %37 = vector.shape_cast %36 : vector<8x128xf32> to vector<1x8x128xf32>
      %cst_22 = arith.constant dense<0.000000e+00> : vector<1xf32>
      %38 = vector.multi_reduction <add>, %37, %cst_22 [1, 2] : vector<1x8x128xf32> to vector<1xf32>
      %39 = vector.shape_cast %38 : vector<1xf32> to vector<1x1x1xf32>
      %40 = vector.extract %39[0, 0, 0] : f32 from vector<1x1x1xf32>
      %c0_23 = arith.constant 0 : index
      %c0_24 = arith.constant 0 : index
      %41 = memref.load %arg4[%c0_23, %c0_24] : memref<1x1xf32, #tpu.memory_space<smem>>
      memref.store %40, %arg4[%c0_23, %c0_24] : memref<1x1xf32, #tpu.memory_space<smem>>
      %c0_25 = arith.constant 0 : index
      %c0_26 = arith.constant 0 : index
      %42 = vector.load %arg7[%c0_25, %c0_26] : memref<8x128xf32, #tpu.memory_space<vmem>>, vector<8x128xf32>
      %43 = vector.shape_cast %42 : vector<8x128xf32> to vector<1x8x128xf32>
      %cst_27 = arith.constant dense<0xFF800000> : vector<1xf32>
      %44 = vector.multi_reduction <maximumf>, %43, %cst_27 [1, 2] : vector<1x8x128xf32> to vector<1xf32>
      %45 = vector.shape_cast %44 : vector<1xf32> to vector<1x1x1xf32>
      %46 = vector.extract %45[0, 0, 0] : f32 from vector<1x1x1xf32>
      %c0_28 = arith.constant 0 : index
      %c0_29 = arith.constant 0 : index
      %47 = memref.load %arg5[%c0_28, %c0_29] : memref<1x1xf32, #tpu.memory_space<smem>>
      memref.store %46, %arg5[%c0_28, %c0_29] : memref<1x1xf32, #tpu.memory_space<smem>>
    } else {
    }
    return
  }
  func.func @transform_0(%arg0: i32, %arg1: i32) -> (i32, i32) {
    %c1_i32 = arith.constant 1 : i32
    %0 = arith.muli %arg0, %c1_i32 : i32
    %1 = arith.addi %0, %arg1 : i32
    %c0_i32 = arith.constant 0 : i32
    %2 = arith.minsi %1, %c0_i32 : i32
    %c0_i32_0 = arith.constant 0 : i32
    %c0_i32_1 = arith.constant 0 : i32
    return %2, %c0_i32_0 : i32, i32
  }
  func.func @transform_1(%arg0: i32, %arg1: i32) -> (i32, i32) {
    %c1_i32 = arith.constant 1 : i32
    %0 = arith.muli %arg0, %c1_i32 : i32
    %1 = arith.addi %0, %arg1 : i32
    %c0_i32 = arith.constant 0 : i32
    %2 = arith.minsi %1, %c0_i32 : i32
    %c0_i32_0 = arith.constant 0 : i32
    %c0_i32_1 = arith.constant 0 : i32
    return %2, %c0_i32_0 : i32, i32
  }
  func.func @transform_2(%arg0: i32, %arg1: i32) -> (i32, i32) {
    %c0_i32 = arith.constant 0 : i32
    %c0_i32_0 = arith.constant 0 : i32
    return %arg0, %c0_i32 : i32, i32
  }
  func.func @transform_3(%arg0: i32, %arg1: i32) -> (i32, i32) {
    %c0_i32 = arith.constant 0 : i32
    %c0_i32_0 = arith.constant 0 : i32
    return %arg0, %c0_i32 : i32, i32
  }
}

</mosaic_0001>

<bundles_post_ra>
// kernel: sdr_loss.1
= control target key start
LH: loop header
LB: loop body
LE: loop exit
PB: predicated region body
PF: predicated region fallthrough
CT: control target
= control target key end

     0   :  { %9 = vsyncpa [#allocation5], 0  ;;  %s265_s0 = inlined_call_operand.vmem [shape: f32[16,128], index: 0, kind: input, shape index: {}]   ;;  %s266_s1 = inlined_call_operand.vmem [shape: f32[16,128], index: 1, kind: input, shape index: {}]   ;;  %s267_s2 = inlined_call_operand.hbm [shape: f32[1,1], index: 2, kind: output, shape index: {0}]   ;;  %s268_s3 = inlined_call_operand.hbm [shape: f32[1,1], index: 3, kind: output, shape index: {1}]  }
   0x1   :  { %v85_v0 = vld [vmem:[%s265_s0] sm:$0xff]  ;;  %v86_v1 = vld [vmem:[%s265_s0 + $0x8] sm:$0xff] }
   0x2   :  { %v87_v2 = vld [vmem:[%s266_s1] sm:$0xff]  ;;  %v88_v3 = vld [vmem:[%s266_s1 + $0x8] sm:$0xff] }
   0x3   :  { %v89_v4 = vsub.f32 %v87_v2, %v85_v0  ;;  %v91_v5 = vmul.f32 %v87_v2, %v87_v2 }
   0x4   :  { %10 = vsyncpa [#allocation7], 0  ;;  %v90_v6 = vsub.f32 %v88_v3, %v86_v1  ;;  %v92_v7 = vmul.f32 %v88_v3, %v88_v3  ;;  %vm113_vm0 = vcmp.ne.f32.partialorder %v87_v2, %v85_v0  ;;  %vm114_vm1 = vcmp.ne.f32.partialorder %v88_v3, %v86_v1  ;;  %s225_s1 = smov [#allocation4]   ;;  %s226_s23 = smov [#allocation6]  }
   0x5   :  { %v93_v8 = vadd.f32 1e-08, %v91_v5  ;;  %v95_v9 = vmul.f32 %v89_v4, %v89_v4  ;;  %v224_v14 = vmov 0.0  }
   0x6   :  { %v94_v10 = vadd.f32 1e-08, %v92_v7  ;;  %v96_v11 = vmul.f32 %v90_v6, %v90_v6  ;;  %v115_v15 = vsel %vm113_vm0, 1.0, %v224_v14  ;;  %v116_v16 = vsel %vm114_vm1, 1.0, %v224_v14 }
   0x7   :  { %v97_v12 = vadd.f32 1e-08, %v95_v9  ;;  %196 = vlog2.f32 %v93_v8  ;;  %v117_v18 = vmax.f32 %v115_v15, %v116_v16 }
   0x8   :  { %v98_v13 = vadd.f32 1e-08, %v96_v11  ;;  %198 = vlog2.f32 %v94_v10 }
   0x9   :  { %200 = vlog2.f32 %v97_v12  ;;  %vm118_vm2 = vcmp.gt.f32.partialorder %v117_v18, 0.0 }
   0xa   :  { %202 = vlog2.f32 %v98_v13  ;;  %v188_v28 = vsel %vm118_vm2, 1.0, %v224_v14 }
   0xb   :  { %v122_v30 = vmax.f32 %v188_v28, 0.0 }
  0x14   :  { %v197_v17 = vpop.eup %196 }
  0x15   :  { %v199_v19 = vpop.eup %198  ;;  %v100_v20 = vmul.f32 0.6931472, %v197_v17 }
  0x16   :  { %v201_v21 = vpop.eup %200  ;;  %v102_v22 = vmul.f32 0.6931472, %v199_v19 }
  0x17   :  { %v203_v23 = vpop.eup %202  ;;  %v104_v24 = vmul.f32 0.6931472, %v201_v21 }
  0x18   :  { %v106_v25 = vmul.f32 0.6931472, %v203_v23 }
  0x19   :  { %v107_v26 = vsub.f32 %v100_v20, %v104_v24 }
  0x1a   :  { %v108_v27 = vsub.f32 %v102_v22, %v106_v25 }
  0x1c   :  { %v110_v29 = vadd.f32 %v108_v27, %v107_v26 }
  0x1e   :  { %128 = vadd.xlane.f32.xlu0 %v110_v29 }
  0x22   :  { %140 = vmax.xlane.f32.xlu0 %v122_v30 }
  0xa7   :  { %v129_v31 = vpop.xlane.xlu0 %128 }
  0xa8   :  { %v130_v32 = vrot.slane %v129_v31, 4 }
  0xaa   :  { %v131_v33 = vadd.f32 %v130_v32, %v129_v31 }
  0xab   :  { %v141_v34 = vpop.xlane.xlu0 %140 }
  0xac   :  { %v132_v35 = vrot.slane %v131_v33, 2  ;;  %v142_v36 = vrot.slane %v141_v34, 4 }
  0xae   :  { %v143_v37 = vmax.f32 %v141_v34, %v142_v36  ;;  %v133_v38 = vadd.f32 %v132_v35, %v131_v33 }
  0xb0   :  { %v144_v39 = vrot.slane %v143_v37, 2  ;;  %v134_v40 = vrot.slane %v133_v38, 1 }
  0xb2   :  { %v145_v41 = vmax.f32 %v143_v37, %v144_v39  ;;  %v135_v42 = vadd.f32 %v134_v40, %v133_v38 }
  0xb4   :  { %189 = vpush %v135_v42  ;;  %v146_v43 = vrot.slane %v145_v41, 1 }
  0xb6   :  { %v147_v44 = vmax.f32 %v145_v41, %v146_v43 }
  0xb8   :  { %191 = vpush %v147_v44 }
  0xe5   :  { %s190_s0 = spop %189 }
  0xe6   :  { %138 = sst [smem:[#allocation4]] %s190_s0 }
  0xe7   :  { %158 = dma.smem_to_hbm %s225_s1, 16, %s267_s2, [#allocation5]  }
  0xe9   :  { %s192_s22 = spop %191 }
  0xea   :  { %150 = sst [smem:[#allocation6]] %s192_s22 }
  0xeb   :  { %166 = dma.smem_to_hbm %s226_s23, 16, %s268_s3, [#allocation7]  }
  0xec   :  { %220 = dma.done.wait [#allocation5], 16  }
  0xed   :  { %221 = vsyncadd [#allocation5], 4294967280 }
  0xee   :  { %222 = dma.done.wait [#allocation7], 16  }
  0xef   :  { %223 = vsyncadd [#allocation7], 4294967280 }
  0xf0   :  { %173 = sfence }
  0xf1   :  { %174 = vsyncpa [#allocation5], 1 }
  0xf2   :  { %175 = vsyncpa [#allocation7], 1 }

</bundles_post_ra>
